<compile_context>
chip_gen: v7x
topology: tpu7x:2x2x1
jax: 0.10.0
libtpu: 0.0.40
codegen_flags: <defaults>
</compile_context>

<pallas_src>
import jax
import jax.numpy as jnp
from jax.experimental import pallas as pl
from jax.experimental.pallas import tpu as pltpu


# ----------------------------- Pallas kernels ------------------------------

def _conv_bn_relu_kernel(w_ref, m_ref, o_ref):
    # (C_out, K_aug) @ (K_aug, tile_p) -> (C_out, tile_p), bias already folded in.
    acc = jnp.dot(w_ref[...], m_ref[...], preferred_element_type=jnp.float32)
    o_ref[...] = jnp.maximum(acc, 0.0)


def _maxpool_3x3_s2_kernel(x_ref, o_ref):
    # x_ref: (1, Ho+2, Wo+2, C) padded with -inf; o_ref: (1, Hp, Wp, C)
    hp, wp = o_ref.shape[1], o_ref.shape[2]
    m = x_ref[:, pl.ds(0, hp, 2), pl.ds(0, wp, 2), :]
    for dh in range(3):
        for dw in range(3):
            if dh == 0 and dw == 0:
                continue
            m = jnp.maximum(m, x_ref[:, pl.ds(dh, hp, 2), pl.ds(dw, wp, 2), :])
    o_ref[...] = m


# ------------------------------ wrappers ------------------------------------

def conv7x7s2_bn_relu_pallas(x, weight, gamma, beta, mean, var, eps=1e-5):
    """Fused Conv2d(C_in->C_out, k=7, s=2, p=3, no bias) + BN(eval) + ReLU.

    x: (B, C_in, H, W). Returns channels-last activations (B, Ho, Wo, C_out), f32.
    """
    B, C_in, H, W = x.shape
    C_out = weight.shape[0]
    Ho = (H + 6 - 7) // 2 + 1
    Wo = (W + 6 - 7) // 2 + 1
    P = B * Ho * Wo

    # Fold BN (inference) into the conv:  w' = w * s,  b' = beta - mean * s
    scale = (gamma / jnp.sqrt(var + eps)).astype(jnp.float32)
    w_f = (weight.astype(jnp.float32) * scale[:, None, None, None]).reshape(C_out, C_in * 49)
    b_f = (beta - mean * scale).astype(jnp.float32)

    # Transposed im2col: K = C_in*49 on sublanes, pixels on the 128-lane axis so the
    # matmul output is lane-dense.
    # TODO(synk): eliminate the HBM im2col slab by building the 49 stride-2 taps
    # inside the kernel from a phase-split (space-to-depth) input tile; kept as host
    # glue here for robustness (the C_out-wide conv output dominates HBM traffic).
    xp = jnp.pad(x.astype(jnp.float32), ((0, 0), (0, 0), (3, 3), (3, 3)))
    taps = [xp[:, :, kh:kh + 2 * Ho - 1:2, kw:kw + 2 * Wo - 1:2]
            for kh in range(7) for kw in range(7)]
    patches = jnp.stack(taps, axis=2)                           # (B, C_in, 49, Ho, Wo)
    M = jnp.transpose(patches, (1, 2, 0, 3, 4)).reshape(C_in * 49, P)

    # Fold the BN bias into the matmul via a ones-row; zero-pad K to a sublane multiple.
    K = C_in * 49
    K_aug = ((K + 1 + 7) // 8) * 8
    M = jnp.concatenate(
        [M, jnp.ones((1, P), jnp.float32),
         jnp.zeros((K_aug - K - 1, P), jnp.float32)], axis=0)    # (K_aug, P)
    W_aug = jnp.concatenate(
        [w_f, b_f[:, None], jnp.zeros((C_out, K_aug - K - 1), jnp.float32)], axis=1)

    # Large lane tiles (review: 512-2048), clamped for tiny inputs; pad pixel count.
    tile_p = min(1024, ((P + 127) // 128) * 128)
    P_pad = ((P + tile_p - 1) // tile_p) * tile_p
    if P_pad != P:
        M = jnp.pad(M, ((0, 0), (0, P_pad - P)))

    slab = pl.pallas_call(
        _conv_bn_relu_kernel,
        out_shape=jax.ShapeDtypeStruct((C_out, P_pad), jnp.float32),
        grid_spec=pltpu.PrefetchScalarGridSpec(
            num_scalar_prefetch=0,
            grid=(P_pad // tile_p,),
            in_specs=[
                pl.BlockSpec((C_out, K_aug), lambda i: (0, 0)),   # weights stay resident
                pl.BlockSpec((K_aug, tile_p), lambda i: (0, i)),
            ],
            out_specs=pl.BlockSpec((C_out, tile_p), lambda i: (0, i)),
        ),
        compiler_params=pltpu.CompilerParams(dimension_semantics=("parallel",)),
    )(W_aug, M)

    y = slab[:, :P].reshape(C_out, B, Ho, Wo)        # pixel ordering is (b, oh, ow)
    return jnp.transpose(y, (1, 2, 3, 0))            # (B, Ho, Wo, C_out) for pooling


def maxpool3x3s2_pallas(y):
    """F.max_pool2d(kernel=3, stride=2, padding=1) on a channels-last (B, H, W, C) slab."""
    B, Ho, Wo, C = y.shape
    Hp = (Ho - 1) // 2 + 1
    Wp = (Wo - 1) // 2 + 1
    y_pad = jnp.pad(y, ((0, 0), (1, 1), (1, 1), (0, 0)),
                    constant_values=-jnp.inf)        # -inf padding == PyTorch semantics

    return pl.pallas_call(
        _maxpool_3x3_s2_kernel,
        out_shape=jax.ShapeDtypeStruct((B, Hp, Wp, C), jnp.float32),
        grid_spec=pltpu.PrefetchScalarGridSpec(
            num_scalar_prefetch=0,
            grid=(B,),
            in_specs=[pl.BlockSpec((1, Ho + 2, Wo + 2, C), lambda b: (b, 0, 0, 0))],
            out_specs=pl.BlockSpec((1, Hp, Wp, C), lambda b: (b, 0, 0, 0)),
        ),
        compiler_params=pltpu.CompilerParams(dimension_semantics=("parallel",)),
    )(y_pad)


def stem_forward(x, conv_weight, bn_gamma, bn_beta, bn_mean, bn_var, eps=1e-5):
    """Forward pass of Stem. Returns (B, C_out, H//4, W//4) float32 (NCHW)."""
    act = conv7x7s2_bn_relu_pallas(x, conv_weight, bn_gamma, bn_beta, bn_mean, bn_var, eps)
    pooled = maxpool3x3s2_pallas(act)                # (B, Hp, Wp, C)
    return jnp.transpose(pooled, (0, 3, 1, 2))       # back to NCHW like PyTorch


# ------------------------------- demo ---------------------------------------

if __name__ == "__main__":
    B, C_in, H, W = 2, 3, 16, 16
    C_out = 64
    eps = 1e-5

    key = jax.random.PRNGKey(0)
    kx, kw, kg, kb, km, kv = jax.random.split(key, 6)
    x = jax.random.normal(kx, (B, C_in, H, W), dtype=jnp.float32)
    conv_w = jax.random.normal(kw, (C_out, C_in, 7, 7), dtype=jnp.float32) * 0.1
    gamma = 1.0 + 0.1 * jax.random.normal(kg, (C_out,), dtype=jnp.float32)
    beta = 0.1 * jax.random.normal(kb, (C_out,), dtype=jnp.float32)
    mean = 0.1 * jax.random.normal(km, (C_out,), dtype=jnp.float32)
    var = jax.random.uniform(kv, (C_out,), dtype=jnp.float32, minval=0.5, maxval=1.5)

    out = jax.jit(stem_forward)(x, conv_w, gamma, beta, mean, var)
    out = jax.block_until_ready(out)
    assert out.shape == (B, C_out, H // 4, W // 4), out.shape

    # Pure-JAX reference (Conv -> BN(eval) -> ReLU -> MaxPool) sanity check.
    conv_ref = jax.lax.conv_general_dilated(
        x, conv_w, window_strides=(2, 2), padding=((3, 3), (3, 3)),
        dimension_numbers=("NCHW", "OIHW", "NCHW"),
        precision=jax.lax.Precision.HIGHEST)
    s = gamma / jnp.sqrt(var + eps)
    act_ref = jnp.maximum(conv_ref * s[None, :, None, None]
                          + (beta - mean * s)[None, :, None, None], 0.0)
    ref = jax.lax.reduce_window(
        act_ref, jnp.float32(-jnp.inf), jax.lax.max,
        window_dimensions=(1, 1, 3, 3), window_strides=(1, 1, 2, 2),
        padding=((0, 0), (0, 0), (1, 1), (1, 1)))
    err = float(jnp.max(jnp.abs(out - ref)))
    assert err < 1e-2, f"max abs err {err}"

    print("KERNEL_OK")
</pallas_src>

<mosaic_0001>
module attributes {stable_mosaic.version = 11 : i64} {
  func.func @_conv_bn_relu_kernel(%arg0: i32, %arg1: memref<64x152xf32, #tpu.memory_space<vmem>>, %arg2: memref<152x128xf32, #tpu.memory_space<vmem>>, %arg3: memref<64x128xf32, #tpu.memory_space<vmem>>) attributes {dimension_semantics = [#tpu.dimension_semantics<parallel>], iteration_bounds = array<i64: 1>, scalar_prefetch = 0 : i64, scratch_operands = 0 : i64, tpu.core_type = #tpu.core_type<tc>, window_params = [{pipeline_mode = #tpu.pipeline_mode<synchronous>, transform_indices = @transform_0, window_bounds = array<i64: 64, 152>}, {transform_indices = @transform_1, window_bounds = array<i64: 152, 128>}, {transform_indices = @transform_2, window_bounds = array<i64: 64, 128>}]} {
    %c0 = arith.constant 0 : index
    %c0_0 = arith.constant 0 : index
    %0 = vector.load %arg1[%c0, %c0_0] : memref<64x152xf32, #tpu.memory_space<vmem>>, vector<64x152xf32>
    %c0_1 = arith.constant 0 : index
    %c0_2 = arith.constant 0 : index
    %1 = vector.load %arg2[%c0_1, %c0_2] : memref<152x128xf32, #tpu.memory_space<vmem>>, vector<152x128xf32>
    %cst = arith.constant dense<0.000000e+00> : vector<64x128xf32>
    %2 = tpu.matmul %0, %1, %cst {dimension_numbers = #tpu.dot_dimension_numbers<[1], [0], [0], [1], [0, 0, 1, 1], [], []>} : vector<64x152xf32>, vector<152x128xf32>, vector<64x128xf32> -> vector<64x128xf32>
    %cst_3 = arith.constant 0.000000e+00 : f32
    %3 = vector.broadcast %cst_3 : f32 to vector<64x128xf32>
    %4 = arith.maximumf %2, %3 : vector<64x128xf32>
    %c0_4 = arith.constant 0 : index
    %c0_5 = arith.constant 0 : index
    %5 = vector.load %arg3[%c0_4, %c0_5] : memref<64x128xf32, #tpu.memory_space<vmem>>, vector<64x128xf32>
    tpu.vector_store %arg3[%c0_4, %c0_5], %4 {strides = array<i32>} : memref<64x128xf32, #tpu.memory_space<vmem>>, vector<64x128xf32>,
    return
  }
  func.func @transform_0(%arg0: i32) -> (i32, i32) {
    %c0_i32 = arith.constant 0 : i32
    %c0_i32_0 = arith.constant 0 : i32
    %c0_i32_1 = arith.constant 0 : i32
    return %c0_i32, %c0_i32_0 : i32, i32
  }
  func.func @transform_1(%arg0: i32) -> (i32, i32) {
    %c0_i32 = arith.constant 0 : i32
    %c0_i32_0 = arith.constant 0 : i32
    return %c0_i32, %arg0 : i32, i32
  }
  func.func @transform_2(%arg0: i32) -> (i32, i32) {
    %c0_i32 = arith.constant 0 : i32
    %c0_i32_0 = arith.constant 0 : i32
    return %c0_i32, %arg0 : i32, i32
  }
}

module attributes {stable_mosaic.version = 11 : i64} {
  func.func @_maxpool_3x3_s2_kernel(%arg0: i32, %arg1: memref<1x10x10x64xf32, #tpu.memory_space<vmem>>, %arg2: memref<1x4x4x64xf32, #tpu.memory_space<vmem>>) attributes {dimension_semantics = [#tpu.dimension_semantics<parallel>], iteration_bounds = array<i64: 2>, scalar_prefetch = 0 : i64, scratch_operands = 0 : i64, tpu.core_type = #tpu.core_type<tc>, window_params = [{transform_indices = @transform_0, window_bounds = array<i64: 1, 10, 10, 64>}, {transform_indices = @transform_1, window_bounds = array<i64: 1, 4, 4, 64>}]} {
    %c0 = arith.constant 0 : index
    %c0_0 = arith.constant 0 : index
    %c0_1 = arith.constant 0 : index
    %c0_2 = arith.constant 0 : index
    %0 = tpu.strided_load %arg1[%c0, %c0_0, %c0_1, %c0_2] {strides = array<i32: 1, 2, 2, 1>} : memref<1x10x10x64xf32, #tpu.memory_space<vmem>>, vector<1x4x4x64xf32>
    %c0_3 = arith.constant 0 : index
    %c0_4 = arith.constant 0 : index
    %c1 = arith.constant 1 : index
    %c0_5 = arith.constant 0 : index
    %1 = tpu.strided_load %arg1[%c0_3, %c0_4, %c1, %c0_5] {strides = array<i32: 1, 2, 2, 1>} : memref<1x10x10x64xf32, #tpu.memory_space<vmem>>, vector<1x4x4x64xf32>
    %2 = arith.maximumf %0, %1 : vector<1x4x4x64xf32>
    %c0_6 = arith.constant 0 : index
    %c0_7 = arith.constant 0 : index
    %c2 = arith.constant 2 : index
    %c0_8 = arith.constant 0 : index
    %3 = tpu.strided_load %arg1[%c0_6, %c0_7, %c2, %c0_8] {strides = array<i32: 1, 2, 2, 1>} : memref<1x10x10x64xf32, #tpu.memory_space<vmem>>, vector<1x4x4x64xf32>
    %4 = arith.maximumf %2, %3 : vector<1x4x4x64xf32>
    %c0_9 = arith.constant 0 : index
    %c1_10 = arith.constant 1 : index
    %c0_11 = arith.constant 0 : index
    %c0_12 = arith.constant 0 : index
    %5 = tpu.strided_load %arg1[%c0_9, %c1_10, %c0_11, %c0_12] {strides = array<i32: 1, 2, 2, 1>} : memref<1x10x10x64xf32, #tpu.memory_space<vmem>>, vector<1x4x4x64xf32>
    %6 = arith.maximumf %4, %5 : vector<1x4x4x64xf32>
    %c0_13 = arith.constant 0 : index
    %c1_14 = arith.constant 1 : index
    %c1_15 = arith.constant 1 : index
    %c0_16 = arith.constant 0 : index
    %7 = tpu.strided_load %arg1[%c0_13, %c1_14, %c1_15, %c0_16] {strides = array<i32: 1, 2, 2, 1>} : memref<1x10x10x64xf32, #tpu.memory_space<vmem>>, vector<1x4x4x64xf32>
    %8 = arith.maximumf %6, %7 : vector<1x4x4x64xf32>
    %c0_17 = arith.constant 0 : index
    %c1_18 = arith.constant 1 : index
    %c2_19 = arith.constant 2 : index
    %c0_20 = arith.constant 0 : index
    %9 = tpu.strided_load %arg1[%c0_17, %c1_18, %c2_19, %c0_20] {strides = array<i32: 1, 2, 2, 1>} : memref<1x10x10x64xf32, #tpu.memory_space<vmem>>, vector<1x4x4x64xf32>
    %10 = arith.maximumf %8, %9 : vector<1x4x4x64xf32>
    %c0_21 = arith.constant 0 : index
    %c2_22 = arith.constant 2 : index
    %c0_23 = arith.constant 0 : index
    %c0_24 = arith.constant 0 : index
    %11 = tpu.strided_load %arg1[%c0_21, %c2_22, %c0_23, %c0_24] {strides = array<i32: 1, 2, 2, 1>} : memref<1x10x10x64xf32, #tpu.memory_space<vmem>>, vector<1x4x4x64xf32>
    %12 = arith.maximumf %10, %11 : vector<1x4x4x64xf32>
    %c0_25 = arith.constant 0 : index
    %c2_26 = arith.constant 2 : index
    %c1_27 = arith.constant 1 : index
    %c0_28 = arith.constant 0 : index
    %13 = tpu.strided_load %arg1[%c0_25, %c2_26, %c1_27, %c0_28] {strides = array<i32: 1, 2, 2, 1>} : memref<1x10x10x64xf32, #tpu.memory_space<vmem>>, vector<1x4x4x64xf32>
    %14 = arith.maximumf %12, %13 : vector<1x4x4x64xf32>
    %c0_29 = arith.constant 0 : index
    %c2_30 = arith.constant 2 : index
    %c2_31 = arith.constant 2 : index
    %c0_32 = arith.constant 0 : index
    %15 = tpu.strided_load %arg1[%c0_29, %c2_30, %c2_31, %c0_32] {strides = array<i32: 1, 2, 2, 1>} : memref<1x10x10x64xf32, #tpu.memory_space<vmem>>, vector<1x4x4x64xf32>
    %16 = arith.maximumf %14, %15 : vector<1x4x4x64xf32>
    %c0_33 = arith.constant 0 : index
    %c0_34 = arith.constant 0 : index
    %c0_35 = arith.constant 0 : index
    %c0_36 = arith.constant 0 : index
    %17 = vector.load %arg2[%c0_33, %c0_34, %c0_35, %c0_36] : memref<1x4x4x64xf32, #tpu.memory_space<vmem>>, vector<1x4x4x64xf32>
    tpu.vector_store %arg2[%c0_33, %c0_34, %c0_35, %c0_36], %16 {strides = array<i32>} : memref<1x4x4x64xf32, #tpu.memory_space<vmem>>, vector<1x4x4x64xf32>,
    return
  }
  func.func @transform_0(%arg0: i32) -> (i32, i32, i32, i32) {
    %c0_i32 = arith.constant 0 : i32
    %c0_i32_0 = arith.constant 0 : i32
    %c0_i32_1 = arith.constant 0 : i32
    %c0_i32_2 = arith.constant 0 : i32
    return %arg0, %c0_i32, %c0_i32_0, %c0_i32_1 : i32, i32, i32, i32
  }
  func.func @transform_1(%arg0: i32) -> (i32, i32, i32, i32) {
    %c0_i32 = arith.constant 0 : i32
    %c0_i32_0 = arith.constant 0 : i32
    %c0_i32_1 = arith.constant 0 : i32
    %c0_i32_2 = arith.constant 0 : i32
    return %arg0, %c0_i32, %c0_i32_0, %c0_i32_1 : i32, i32, i32, i32
  }
}

</mosaic_0001>

<bundles_post_ra>
// kernel: stem_forward.3
= control target key start
LH: loop header
LB: loop body
LE: loop exit
PB: predicated region body
PF: predicated region fallthrough
CT: control target
= control target key end

     0   :  { %6 = vsyncpa [#allocation3], 0  ;;  %s646_s0 = inlined_call_operand.vmem [shape: f32[2,10,10,64], index: 0, kind: input, shape index: {}]   ;;  %s647_s1 = inlined_call_operand.hbm [shape: f32[2,4,4,64], index: 1, kind: output, shape index: {}]  }
   0x1   :  { %8 = vsyncpa [#allocation3 + $0x1], 0  ;;  %s487_s6 = smov 0   ;;  %s489_s7 = smov 0  }
   0x2   :  { %s491_s8 = smov 0   ;;  %s493_s9 = smov 0  }
   0x3 LB: > { %s508_s10 = sadd.s32 4294967295, %s472_s9   ;;  %s321_s11 = sadd.s32 4294967294, %s472_s9   ;;  %s472_s9 = sphi %s493_s9, %s653_s9   ;;  %s468_s8 = sphi %s491_s8, %s652_s8   ;;  %s464_s7 = sphi %s489_s7, %s651_s7   ;;  %s460_s6 = sphi %s487_s6, %s650_s6  }
   0x4   : > { %s512_s12 = sadd.s32 1, %s472_s9   ;;  %s47_s13 = sadd.s32 1, %s468_s8 }
   0x5   : > { %s44_s14 = ssub.s32 %s472_s9, %s512_s12  ;;  %p57_p0 = scmp.ne.s32.totalorder %s468_s8, %s464_s7 }
   0x6   : > { %p45_p1 = scmp.eq.s32.totalorder %s44_s14, 0  ;;  %p58_p2 = scmp.eq.s32.totalorder %s508_s10, 1 }
   0x7   : > { %p63_p3 = scmp.ne.s32.totalorder %s464_s7, %s460_s6  ;;  %p64_p4 = scmp.eq.s32.totalorder %s321_s11, 1 }
   0x8   : > { %s523_s15 = scalar_select %p45_p1, %s468_s8, %s47_s13  }
   0x9   : > { %p525_p5 = por %p58_p2, %p57_p0  ;;  %p529_p6 = por %p64_p4, %p63_p3 }
   0xa   : > { %p324_p7 = scmp.ge.s32.totalorder %s472_s9, 1  ;;  %p90_p8 = scmp.lt.s32.totalorder %s472_s9, 3 }
   0xc   : > { %p91_p9 = pnand %p324_p7, %p90_p8 }
   0xd   : > { %p110_p10 = scmp.lt.s32.totalorder (!%p91_p9), %s508_s10, 1  ;;  %s107_s20 = sand.u32 (!%p91_p9), 1, %s464_s7   ;;  %vm218_vm0 = vcmask (!%p91_p9), 519168  }
   0xe   : > { %94 = sbr.rel (%p91_p9) target bundleno = 69 (0x45), region = 24  ;;  %s549_s24 = sshll.u32 (!%p91_p9), %s107_s20, 4 }
   0xf   : > { %s575_s25 = scalar_lea.vmem (!%p91_p9), [#allocation2], %s549_s24  ;;  %s367_s27 = sshll.u32 (!%p91_p9), %s508_s10, 8 }
  0x10   : > { %s237_s26 = sshll.u32 (!%p91_p9), %s575_s25, 4  ;;  %s599_s30 = scalar_lea.hbm (!%p91_p9), %s647_s1, %s367_s27  ;;  %s594_s26 = int_to_ptr.vmem [resolvable:$true] %s237_s26 }
  0x11   : > { %s605_s2 = scalar_lea.sflag (!%p91_p9), [#allocation3], %s107_s20  ;;  %s410_s3 = scalar_lea.vmem (!%p91_p9), %s594_s26, 256 }
  0x12   : > { %p411_p11 = scmp.ne.s32.totalorder (!%p91_p9), %s594_s26, %s410_s3  ;;  %s474_s4 = smov (!%p91_p9), [#allocation2]  }
  0x13   : > { %s414_s5 = sshll.u32 (!%p91_p9), %s474_s4, 4  ;;  %s415_s5 = int_to_ptr.vmem [resolvable:$false] %s414_s5 }
  0x14   : > { %p412_p12 = pnand (!%p91_p9), %p411_p11, %p525_p5  ;;  %p417_p0 = scmp.lt.s32.totalorder (!%p91_p9), %s594_s26, %s415_s5 }
  0x15   : > { %s111_s18 = scalar_select %p110_p10, %s508_s10, 1 }
  0x16   : > { %p413_p13 = pneg %p412_p12  ;;  %s416_s10 = scalar_lea.vmem %s415_s5, 512 }
  0x17   : > { %s368_s19 = smul.u32 160, %s111_s18  ;;  %p418_p1 = scmp.lt.s32.totalorder %s416_s10, %s410_s3 }
  0x19   : > { %s541_s23 = scalar_lea.vmem %s646_s0, %s368_s19  ;;  %p419_p2 = por %p418_p1, %p417_p0 }
  0x1a   : > { %v115_v0 = vld [vmem:[%s541_s23] ss:$2 sm:$0xf]  ;;  %v330_v1 = vld [vmem:[%s541_s23 + $0x1] ss:$2 sm:$0xf] }
  0x1b   : > { %v130_v2 = vmax.f32 %v115_v0, %v330_v1  ;;  %v334_v3 = vld [vmem:[%s541_s23 + $0x2] ss:$2 sm:$0xf]  ;;  %v338_v4 = vld [vmem:[%s541_s23 + $0x10] ss:$2 sm:$0xf]  ;;  %p420_p3 = pnand %p419_p2, %p413_p13 }
  0x1c   : > { %v342_v6 = vld [vmem:[%s541_s23 + $0x11] ss:$2 sm:$0xf]  ;;  %v327_v7 = vld [vmem:[%s541_s23 + $0x20] ss:$2 sm:$0xf] }
  0x1d   : > { %v142_v5 = vmax.f32 %v130_v2, %v334_v3  ;;  %v331_v9 = vld [vmem:[%s541_s23 + $0x21] ss:$2 sm:$0xf]  ;;  %v335_v10 = vld [vmem:[%s541_s23 + $0x22] ss:$2 sm:$0xf] }
  0x1e   : > { %v346_v11 = vld [vmem:[%s541_s23 + $0x12] ss:$2 sm:$0xf]  ;;  %v131_v12 = vmax.f32 %v327_v7, %v331_v9  ;;  %v350_v15 = vld [vmem:[%s541_s23 + $0x20] ss:$2 sm:$0xf] }
  0x1f   : > { %v154_v8 = vmax.f32 %v142_v5, %v338_v4  ;;  %v339_v14 = vld [vmem:[%s541_s23 + $0x30] ss:$2 sm:$0xf]  ;;  %v343_v17 = vld [vmem:[%s541_s23 + $0x31] ss:$2 sm:$0xf] }
  0x20   : > { %v143_v16 = vmax.f32 %v131_v12, %v335_v10  ;;  %v328_v19 = vld [vmem:[%s541_s23 + $0x40] ss:$2 sm:$0xf]  ;;  %v332_v20 = vld [vmem:[%s541_s23 + $0x41] ss:$2 sm:$0xf] }
  0x21   : > { %v166_v13 = vmax.f32 %v154_v8, %v342_v6  ;;  %v354_v21 = vld [vmem:[%s541_s23 + $0x21] ss:$2 sm:$0xf]  ;;  %v132_v23 = vmax.f32 %v328_v19, %v332_v20  ;;  %v336_v24 = vld [vmem:[%s541_s23 + $0x42] ss:$2 sm:$0xf] }
  0x22   : > { %v155_v22 = vmax.f32 %v143_v16, %v339_v14  ;;  %v347_v26 = vld [vmem:[%s541_s23 + $0x32] ss:$2 sm:$0xf]  ;;  %v358_v28 = vld [vmem:[%s541_s23 + $0x22] ss:$2 sm:$0xf] }
  0x23   : > { %v178_v18 = vmax.f32 %v166_v13, %v346_v11  ;;  %v340_v27 = vld [vmem:[%s541_s23 + $0x50] ss:$2 sm:$0xf]  ;;  %v351_v30 = vld [vmem:[%s541_s23 + $0x40] ss:$2 sm:$0xf]  ;;  %v144_v31 = vmax.f32 %v132_v23, %v336_v24 }
  0x24   : > { %v167_v29 = vmax.f32 %v155_v22, %v343_v17  ;;  %v344_v33 = vld [vmem:[%s541_s23 + $0x51] ss:$2 sm:$0xf]  ;;  %v329_v34 = vld [vmem:[%s541_s23 + $0x60] ss:$2 sm:$0xf] }
  0x25   : > { %v190_v25 = vmax.f32 %v178_v18, %v350_v15  ;;  %v156_v36 = vmax.f32 %v144_v31, %v340_v27  ;;  %v333_v37 = vld [vmem:[%s541_s23 + $0x61] ss:$2 sm:$0xf]  ;;  %v337_v38 = vld [vmem:[%s541_s23 + $0x62] ss:$2 sm:$0xf] }
  0x26   : > { %v179_v35 = vmax.f32 %v167_v29, %v347_v26  ;;  %v355_v40 = vld [vmem:[%s541_s23 + $0x41] ss:$2 sm:$0xf]  ;;  %v348_v41 = vld [vmem:[%s541_s23 + $0x52] ss:$2 sm:$0xf]  ;;  %v133_v42 = vmax.f32 %v329_v34, %v333_v37 }
  0x27   : > { %v202_v32 = vmax.f32 %v190_v25, %v354_v21  ;;  %v168_v44 = vmax.f32 %v156_v36, %v344_v33  ;;  %v341_v45 = vld [vmem:[%s541_s23 + $0x70] ss:$2 sm:$0xf]  ;;  %v359_v46 = vld [vmem:[%s541_s23 + $0x42] ss:$2 sm:$0xf] }
  0x28   : > { %v191_v43 = vmax.f32 %v179_v35, %v351_v30  ;;  %v352_v47 = vld [vmem:[%s541_s23 + $0x60] ss:$2 sm:$0xf]  ;;  %v145_v48 = vmax.f32 %v133_v42, %v337_v38  ;;  %v345_v51 = vld [vmem:[%s541_s23 + $0x71] ss:$2 sm:$0xf] }
  0x29   : > { %v214_v39 = vmax.f32 %v202_v32, %v358_v28  ;;  %v180_v50 = vmax.f32 %v168_v44, %v348_v41  ;;  %v356_v52 = vld [vmem:[%s541_s23 + $0x61] ss:$2 sm:$0xf]  ;;  %v349_v56 = vld [vmem:[%s541_s23 + $0x72] ss:$2 sm:$0xf] }
  0x2a   : > { %v203_v49 = vmax.f32 %v191_v43, %v355_v40  ;;  %v157_v53 = vmax.f32 %v145_v48, %v341_v45  ;;  %v360_v57 = vld [vmem:[%s541_s23 + $0x62] ss:$2 sm:$0xf]  ;;  %v357_v63 = vld [vmem:[%s541_s23 + $0x81] ss:$2 sm:$0xf] }
  0x2b   : > { %219 = vst.msk [vmem:[%s575_s25] sm:$0xf] %vm218_vm0, %v214_v39  ;;  %v192_v55 = vmax.f32 %v180_v50, %v352_v47  ;;  %v353_v60 = vld [vmem:[%s541_s23 + $0x80] ss:$2 sm:$0xf] }
  0x2c   : > { %v215_v54 = vmax.f32 %v203_v49, %v359_v46  ;;  %v169_v58 = vmax.f32 %v157_v53, %v345_v51  ;;  %v361_v1 = vld [vmem:[%s541_s23 + $0x82] ss:$2 sm:$0xf] }
  0x2d   : > { %v204_v59 = vmax.f32 %v192_v55, %v356_v52 }
  0x2e   : > { %220 = vst.msk [vmem:[%s575_s25 + $0x4] sm:$0xf] %vm218_vm0, %v215_v54  ;;  %v181_v61 = vmax.f32 %v169_v58, %v349_v56 }
  0x2f   : > { %v216_v62 = vmax.f32 %v204_v59, %v360_v57 }
  0x30   : > { %v193_v0 = vmax.f32 %v181_v61, %v353_v60 }
  0x31   : > { %221 = vst.msk [vmem:[%s575_s25 + $0x8] sm:$0xf] %vm218_vm0, %v216_v62 }
  0x32   : > { %v205_v2 = vmax.f32 %v193_v0, %v357_v63 }
  0x34   : > { %v217_v3 = vmax.f32 %v205_v2, %v361_v1 }
  0x36   : > { %222 = vst.msk [vmem:[%s575_s25 + $0xc] sm:$0xf] %vm218_vm0, %v217_v3 }
  0x37   : > { %423 = shalt.err (!%p420_p3)
}
  0x38   : > { %s424_s11 = scalar_lea.hbm %s599_s30, 256  ;;  %s428_s18 = scalar_lea.hbm %s647_s1, 512 }
  0x39   : > { %p425_p4 = scmp.ne.s32.totalorder %s599_s30, %s424_s11  ;;  %p429_p9 = scmp.lt.u32.totalorder %s599_s30, %s647_s1 }
  0x3a   : > { %p430_p10 = scmp.lt.u32.totalorder %s428_s18, %s424_s11  ;;  %p432_p12 = scmp.lt.u32.totalorder %s424_s11, %s599_s30 }
  0x3b   : > { %p426_p7 = pnand %p425_p4, %p525_p5 }
  0x3c   : > { %p431_p11 = por %p430_p10, %p429_p9 }
  0x3d   : > { %p427_p8 = pneg %p426_p7 }
  0x3e   : > { %p433_p13 = por %p432_p12, %p431_p11 }
  0x40   : > { %p434_p0 = pnand %p433_p13, %p427_p8 }
  0x42   : > { %437 = shalt.err (!%p434_p0)
}
  0x43   : > { %s475_s21 = smov 64   ;;  %s476_s22 = smov 4  }
  0x44   : > { %369 = dma.vmem_to_hbm [thread:$0]  (%p525_p5), %s594_s26, 256, %s599_s30, %s605_s2, %s475_s21, %s475_s21, %s476_s22  }
  0x45 PF: > { %p375_p1 = scmp.ge.s32.totalorder %s472_s9, 2  ;;  %s252_s23 = sand.u32 1, %s460_s6  }
  0x46   : > { %s253_s24 = scalar_lea.sflag [#allocation3], %s252_s23 }
  0x47   : > { %p372_p2 = pnand %p375_p1, %p529_p6 }
  0x49   : > { %455 = dma.done.wait (!%p372_p2), %s253_s24, 256  }
  0x4a   : > { %457 = vsyncadd (!%p372_p2), %s253_s24, 4294967040  ;;  %p11_p3 = scmp.ge.s32.totalorder %s512_s12, 4   ;;  %s650_s6 = smov %s464_s7 }
  0x4b   : > { %s651_s7 = smov %s468_s8  ;;  %s652_s8 = smov %s523_s15 }
  0x4c   : > { %s653_s9 = smov %s512_s12  ;;  %13 = sbr.rel (!%p11_p3) target bundleno = 3 (0x3), region = 94 }
  0x53   :  { %258 = vsyncpa [#allocation3], 1 }
  0x54   :  { %260 = vsyncpa [#allocation3 + $0x1], 1 }

// kernel: stem_forward.2
= control target key start
LH: loop header
LB: loop body
LE: loop exit
PB: predicated region body
PF: predicated region fallthrough
CT: control target
= control target key end

     0   :  { %v253_v0 = vmov 0.0|0.0   ;;  %vm46_vm0 = vcmask 195584   ;;  %v254_v30 = vmov 0.0   ;;  %s425_s1 = inlined_call_operand.vmem [shape: f32[152,128], index: 1, kind: input, shape index: {}]   ;;  %s426_s0 = inlined_call_operand.vmem [shape: f32[64,152], index: 0, kind: input, shape index: {}]   ;;  %s427_s2 = inlined_call_operand.vmem [shape: f32[64,128], index: 2, kind: output, shape index: {}]  }
   0x1   :  { %204 = vmatprep.subr.bf16.mxu0 %v253_v0  ;;  %231 = vmatprep.subr.bf16.mxu1 %v253_v0  ;;  %v27_v1 = vld [vmem:[%s425_s1] sm:$0xff]  ;;  %v28_v2 = vld [vmem:[%s425_s1 + $0x8] sm:$0xff]  ;;  %v29_v3 = vld [vmem:[%s425_s1 + $0x10] sm:$0xff] }
   0x2   :  { %v205_v4 = vpack.c.bf16 %v28_v2, %v27_v1  ;;  %v30_v5 = vld [vmem:[%s425_s1 + $0x18] sm:$0xff]  ;;  %v31_v7 = vld [vmem:[%s425_s1 + $0x20] sm:$0xff]  ;;  %v32_v8 = vld [vmem:[%s425_s1 + $0x28] sm:$0xff] }
   0x3   :  { %v208_v6 = vpack.c.bf16 %v30_v5, %v29_v3  ;;  %v12_v9 = vld [vmem:[%s426_s0 + $0x8] sm:$0xff]  ;;  %v211_v11 = vpack.c.bf16 %v32_v8, %v31_v7  ;;  %v33_v12 = vld [vmem:[%s425_s1 + $0x30] sm:$0xff]  ;;  %v34_v13 = vld [vmem:[%s425_s1 + $0x38] sm:$0xff] }
   0x4   :  { %206 = vmatpush1.bf16.msra.mxu0 %v205_v4  ;;  %241 = vmatpush1.bf16.msra.mxu1 %v205_v4  ;;  %v20_v10 = vld [vmem:[%s426_s0 + $0x48] sm:$0xff]  ;;  %v214_v14 = vpack.c.bf16 %v34_v13, %v33_v12  ;;  %v35_v15 = vld [vmem:[%s425_s1 + $0x40] sm:$0xff]  ;;  %v37_v18 = vld [vmem:[%s425_s1 + $0x50] sm:$0xff] }
   0x5   :  { %207 = vmatprep.subr.bf16.mxu0 %v253_v0  ;;  %232 = vmatprep.subr.bf16.mxu1 %v253_v0  ;;  %v36_v16 = vld [vmem:[%s425_s1 + $0x48] sm:$0xff]  ;;  %v38_v19 = vld [vmem:[%s425_s1 + $0x58] sm:$0xff]  ;;  %v39_v21 = vld [vmem:[%s425_s1 + $0x60] sm:$0xff] }
   0x6   :  { %196 = vmatprep.mubr.msk.f32.mxu0 %vm46_vm0, %v12_v9  ;;  %200 = vmatprep.mubr.msk.f32.mxu1 %vm46_vm0, %v20_v10  ;;  %v217_v17 = vpack.c.bf16 %v36_v16, %v35_v15  ;;  %v220_v20 = vpack.c.bf16 %v38_v19, %v37_v18  ;;  %v40_v22 = vld [vmem:[%s425_s1 + $0x68] sm:$0xff]  ;;  %v41_v24 = vld [vmem:[%s425_s1 + $0x70] sm:$0xff]  ;;  %v42_v25 = vld [vmem:[%s425_s1 + $0x78] sm:$0xff] }
   0x7   :  { %v223_v23 = vpack.c.bf16 %v40_v22, %v39_v21  ;;  %v226_v26 = vpack.c.bf16 %v42_v25, %v41_v24  ;;  %v43_v27 = vld [vmem:[%s425_s1 + $0x80] sm:$0xff]  ;;  %v44_v28 = vld [vmem:[%s425_s1 + $0x88] sm:$0xff]  ;;  %v45_v31 = vld [vmem:[%s425_s1 + $0x90] sm:$0xff] }
   0x8   :  { %209 = vmatpush1.bf16.msra.mxu0 %v208_v6  ;;  %242 = vmatpush1.bf16.msra.mxu1 %v208_v6  ;;  %v229_v29 = vpack.c.bf16 %v44_v28, %v43_v27  ;;  %v11_v32 = vld [vmem:[%s426_s0] sm:$0xff]  ;;  %v14_v34 = vld [vmem:[%s426_s0 + $0x18] sm:$0xff]  ;;  %v13_v36 = vld [vmem:[%s426_s0 + $0x10] sm:$0xff] }
   0x9   :  { %210 = vmatprep.subr.bf16.mxu0 %v253_v0  ;;  %233 = vmatprep.subr.bf16.mxu1 %v253_v0  ;;  %v19_v33 = vld [vmem:[%s426_s0 + $0x40] sm:$0xff]  ;;  %v22_v35 = vld [vmem:[%s426_s0 + $0x58] sm:$0xff]  ;;  %v21_v37 = vld [vmem:[%s426_s0 + $0x50] sm:$0xff] }
   0xa   :  { %v16_v38 = vld [vmem:[%s426_s0 + $0x28] sm:$0xff]  ;;  %v15_v40 = vld [vmem:[%s426_s0 + $0x20] sm:$0xff]  ;;  %v18_v42 = vld [vmem:[%s426_s0 + $0x38] sm:$0xff] }
   0xb   :  { %v24_v39 = vld [vmem:[%s426_s0 + $0x68] sm:$0xff]  ;;  %v23_v41 = vld [vmem:[%s426_s0 + $0x60] sm:$0xff]  ;;  %v26_v43 = vld [vmem:[%s426_s0 + $0x78] sm:$0xff] }
   0xc   :  { %212 = vmatpush1.bf16.msra.mxu0 %v211_v11  ;;  %243 = vmatpush1.bf16.msra.mxu1 %v211_v11  ;;  %v17_v44 = vld [vmem:[%s426_s0 + $0x30] sm:$0xff] }
   0xd   :  { %213 = vmatprep.subr.bf16.mxu0 %v253_v0  ;;  %234 = vmatprep.subr.bf16.mxu1 %v253_v0  ;;  %v25_v45 = vld [vmem:[%s426_s0 + $0x70] sm:$0xff] }
  0x10   :  { %215 = vmatpush1.bf16.msra.mxu0 %v214_v14  ;;  %244 = vmatpush1.bf16.msra.mxu1 %v214_v14 }
  0x11   :  { %216 = vmatprep.subr.bf16.mxu0 %v253_v0  ;;  %235 = vmatprep.subr.bf16.mxu1 %v253_v0 }
  0x14   :  { %218 = vmatpush1.bf16.msra.mxu0 %v217_v17  ;;  %245 = vmatpush1.bf16.msra.mxu1 %v217_v17 }
  0x15   :  { %219 = vmatprep.subr.bf16.mxu0 %v253_v0  ;;  %236 = vmatprep.subr.bf16.mxu1 %v253_v0 }
  0x18   :  { %221 = vmatpush1.bf16.msra.mxu0 %v220_v20  ;;  %246 = vmatpush1.bf16.msra.mxu1 %v220_v20 }
  0x19   :  { %222 = vmatprep.subr.bf16.mxu0 %v253_v0  ;;  %237 = vmatprep.subr.bf16.mxu1 %v253_v0 }
  0x1c   :  { %224 = vmatpush1.bf16.msra.mxu0 %v223_v23  ;;  %247 = vmatpush1.bf16.msra.mxu1 %v223_v23 }
  0x1d   :  { %225 = vmatprep.subr.bf16.mxu0 %v253_v0  ;;  %238 = vmatprep.subr.bf16.mxu1 %v253_v0 }
  0x20   :  { %227 = vmatpush1.bf16.msra.mxu0 %v226_v26  ;;  %248 = vmatpush1.bf16.msra.mxu1 %v226_v26 }
  0x21   :  { %228 = vmatprep.subr.bf16.mxu0 %v253_v0  ;;  %239 = vmatprep.subr.bf16.mxu1 %v253_v0 }
  0x24   :  { %230 = vmatpush1.bf16.msra.mxu0 %v229_v29  ;;  %249 = vmatpush1.bf16.msra.mxu1 %v229_v29 }
  0x25   :  { %107 = vmatprep.subr.mxu0 %v254_v30  ;;  %240 = vmatprep.subr.mxu1 %v254_v30 }
  0x28   :  { %108 = vmatpush1.msra.mxu0 %v45_v31  ;;  %250 = vmatpush1.msra.mxu1 %v45_v31 }
  0x29   :  { %136 = vmatmul.mubr.f32.vlgmr.msra.gmra.mrb[0].mxu0 %v11_v32  ;;  %156 = vmatmul.mubr.f32.vlgmr.msra.gmra.mrb[0].mxu1 %v19_v33 }
  0x2a   :  { %197 = vmatprep.mubr.msk.f32.mxu0 %vm46_vm0, %v14_v34  ;;  %201 = vmatprep.mubr.msk.f32.mxu1 %vm46_vm0, %v22_v35 }
  0x2d   :  { %141 = vmatmul.mubr.f32.gmra.mrb[2].mxu0 %v13_v36  ;;  %161 = vmatmul.mubr.f32.gmra.mrb[2].mxu1 %v21_v37 }
  0x2e   :  { %198 = vmatprep.mubr.msk.f32.mxu0 %vm46_vm0, %v16_v38  ;;  %202 = vmatprep.mubr.msk.f32.mxu1 %vm46_vm0, %v24_v39 }
  0x31   :  { %146 = vmatmul.mubr.f32.gmra.mrb[4].mxu0 %v15_v40  ;;  %166 = vmatmul.mubr.f32.gmra.mrb[4].mxu1 %v23_v41 }
  0x32   :  { %199 = vmatprep.mubr.msk.f32.mxu0 %vm46_vm0, %v18_v42  ;;  %203 = vmatprep.mubr.msk.f32.mxu1 %vm46_vm0, %v26_v43 }
  0x35   :  { %151 = vmatmul.mubr.f32.gmra.mrb[6].mxu0 %v17_v44  ;;  %171 = vmatmul.mubr.f32.gmra.mrb[6].mxu1 %v25_v45 }
  0xfc   :  { %v137_v46 = vpop.f32.mrb[0].mxu0  ;;  %v157_v47 = vpop.f32.mrb[0].mxu1 }
  0xfd   :  { %v176_v48 = vmax.f32 %v137_v46, 0.0  ;;  %v180_v49 = vmax.f32 %v157_v47, 0.0  ;;  %v139_v50 = vpop.f32.mrb[1].mxu0  ;;  %v159_v51 = vpop.f32.mrb[1].mxu1 }
  0xff   :  { %184 = vst [vmem:[%s427_s2] sm:$0xff] %v176_v48  ;;  %188 = vst [vmem:[%s427_s2 + $0x20] sm:$0xff] %v180_v49 }
 0x100   :  { %v142_v52 = vpop.f32.mrb[2].mxu0  ;;  %v162_v53 = vpop.f32.mrb[2].mxu1 }
 0x101   :  { %v177_v54 = vmax.f32 %v142_v52, 0.0  ;;  %v181_v55 = vmax.f32 %v162_v53, 0.0  ;;  %v144_v56 = vpop.f32.mrb[3].mxu0  ;;  %v164_v57 = vpop.f32.mrb[3].mxu1 }
 0x103   :  { %185 = vst [vmem:[%s427_s2 + $0x8] sm:$0xff] %v177_v54  ;;  %189 = vst [vmem:[%s427_s2 + $0x28] sm:$0xff] %v181_v55 }
 0x104   :  { %v147_v58 = vpop.f32.mrb[4].mxu0  ;;  %v167_v59 = vpop.f32.mrb[4].mxu1 }
 0x105   :  { %v178_v60 = vmax.f32 %v147_v58, 0.0  ;;  %v182_v61 = vmax.f32 %v167_v59, 0.0  ;;  %v149_v62 = vpop.f32.mrb[5].mxu0  ;;  %v169_v63 = vpop.f32.mrb[5].mxu1 }
 0x107   :  { %186 = vst [vmem:[%s427_s2 + $0x10] sm:$0xff] %v178_v60  ;;  %190 = vst [vmem:[%s427_s2 + $0x30] sm:$0xff] %v182_v61 }
 0x108   :  { %v152_v0 = vpop.f32.mrb[6].mxu0  ;;  %v172_v1 = vpop.f32.mrb[6].mxu1 }
 0x109   :  { %v179_v2 = vmax.f32 %v152_v0, 0.0  ;;  %v183_v3 = vmax.f32 %v172_v1, 0.0  ;;  %v154_v4 = vpop.f32.mrb[7].mxu0  ;;  %v174_v5 = vpop.f32.mrb[7].mxu1 }
 0x10b   :  { %187 = vst [vmem:[%s427_s2 + $0x18] sm:$0xff] %v179_v2  ;;  %191 = vst [vmem:[%s427_s2 + $0x38] sm:$0xff] %v183_v3 }

</bundles_post_ra>
